<compile_context>
chip_gen: v7x
topology: tpu7x:2x2x1
jax: 0.10.0
libtpu: 0.0.40
codegen_flags: <defaults>
</compile_context>

<pallas_src>
import functools

import jax
import jax.numpy as jnp
import numpy as np
from jax import lax
from jax.experimental import pallas as pl
from jax.experimental.pallas import tpu as pltpu

_SB = 128  # fixed sub-block length for the two-level prefix scan


def _round_up(x, m):
    return ((x + m - 1) // m) * m


def _vmem_capacity_bytes():
    """Generation-aware VMEM capacity (128 MiB v5e/v6e, 64 MiB v7x)."""
    try:
        info = pltpu.get_tpu_info()
        cap = int(getattr(info, "vmem_capacity_bytes", 0))
        if cap > 0:
            return cap
    except Exception:
        pass
    return 64 * 1024 * 1024  # conservative fallback (v7x-sized)


def _choose_time_block(t, fcp, itemsize, requested, budget):
    """Rows of time per grid step, limited by the per-generation VMEM budget."""
    # Per-row VMEM: double-buffered in+out tiles, ~3 f32 full-tile temporaries,
    # plus the lane-padded (TT,1) columns (mask tile + row-stat temporaries).
    per_row = fcp * (4 * itemsize + 3 * 4) + 12 * 128 * 4
    tt = max(budget // max(per_row, 1), 8)
    tt = min(tt, int(requested))
    tt = min(tt, _round_up(t, 8))          # never exceed the (rounded) sequence
    if tt >= _SB:
        tt = (tt // _SB) * _SB             # multiple of the scan sub-block
    else:
        tt = max((tt // 8) * 8, 8)         # sublane multiple
    return tt


def _prefix_scan(tri, stats, carry):
    """Inclusive prefix sum over rows of `stats` (tt, 1), seeded by `carry` (1, 1).

    Two-level: per sub-block (sb rows) prefix via a lower-triangular MXU matmul
    (the matmuls are independent), chained by exact f32 (1,1) carries.
    Returns (cum (tt, 1), new_carry (1, 1)).
    """
    tt = stats.shape[0]
    sb = tri.shape[0]
    pieces = []
    c = carry
    for i in range(tt // sb):
        blk = lax.slice_in_dim(stats, i * sb, (i + 1) * sb, axis=0)
        loc = jnp.dot(tri, blk, preferred_element_type=jnp.float32) + c
        pieces.append(loc)
        c = lax.slice_in_dim(loc, sb - 1, sb, axis=0)
    cum = pieces[0] if len(pieces) == 1 else jnp.concatenate(pieces, axis=0)
    return cum, c


def _cgn_kernel(*refs, eps, fc_true, t_total, has_mask, needs_tail_mask):
    """One grid step = one (batch b, time-tile) block of shape (TT, FCp)."""
    if has_mask:
        x_ref, m_ref, s_ref, o_ref, tri_ref, csum_ref, ccnt_ref, csq_ref = refs
    else:
        x_ref, s_ref, o_ref, tri_ref, csum_ref, ccnt_ref, csq_ref = refs

    tb = pl.program_id(1)
    tt = x_ref.shape[0]
    sb = tri_ref.shape[0]

    # Per-batch-row init: reset carries and (re)build the triangular matrix
    # once per batch instead of once per grid step.
    @pl.when(tb == 0)
    def _():
        rows = lax.broadcasted_iota(jnp.int32, (sb, sb), 0)
        cols = lax.broadcasted_iota(jnp.int32, (sb, sb), 1)
        tri_ref[...] = (cols <= rows).astype(jnp.float32)
        csum_ref[...] = jnp.zeros_like(csum_ref)
        ccnt_ref[...] = jnp.zeros_like(ccnt_ref)
        csq_ref[...] = jnp.zeros_like(csq_ref)

    tri = tri_ref[...]
    x = x_ref[...].astype(jnp.float32)                    # (TT, FCp)
    fc = jnp.float32(fc_true)                             # true (unpadded) F*C

    # Per-row statistics (lane reductions; padded lanes are zero -> neutral).
    row_sum = jnp.sum(x, axis=-1, keepdims=True)          # (TT, 1)
    row_sumsq = jnp.sum(x * x, axis=-1, keepdims=True)    # (TT, 1)
    if has_mask:
        m = m_ref[...].astype(jnp.float32)                # (TT, 1)
        row_cnt = m * fc
    else:
        row_cnt = jnp.full((tt, 1), fc, jnp.float32)

    if needs_tail_mask:
        # The last time tile may be partially out of bounds: those rows hold
        # stale/garbage VMEM.  Zero their per-row stats so they cannot poison
        # the prefix-sum matmuls (0 * NaN = NaN); their outputs rows are
        # dropped by Pallas's bounds-masked writeback.  Garbage is strictly
        # trailing and carries reset at tb == 0, so valid rows stay exact.
        gr = tb * tt + lax.broadcasted_iota(jnp.int32, (tt, 1), 0)
        valid = (gr < t_total).astype(jnp.float32)
        row_sum = row_sum * valid
        row_sumsq = row_sumsq * valid
        row_cnt = row_cnt * valid

    # Cumulative sum / count (torch.cumsum along dim=1), seeded by the carries.
    cum_sum, c_sum = _prefix_scan(tri, row_sum, csum_ref[...])
    cum_cnt, c_cnt = _prefix_scan(tri, row_cnt, ccnt_ref[...])
    csum_ref[...] = c_sum
    ccnt_ref[...] = c_cnt

    safe_cnt = jnp.maximum(cum_cnt, 1.0)                  # clamp(min=1)
    mean = cum_sum / safe_cnt                             # (TT, 1)

    # Per-row squared-diff sum via the algebraic identity (single x pass).
    row_sq = row_sumsq - mean * (2.0 * row_sum - fc * mean)

    cum_sq, c_sq = _prefix_scan(tri, row_sq, csq_ref[...])
    csq_ref[...] = c_sq

    var = jnp.maximum(cum_sq, 0.0) / safe_cnt
    inv_std = lax.rsqrt(var + eps)                        # (TT, 1)
    if has_mask:
        inv_std = inv_std * m                             # fold output mask in

    # Normalize path: 3 full-tile VPU ops (sub + 2 broadcast muls) + cast.
    out = (x - mean) * inv_std * s_ref[...]               # scale: (1, FCp)
    o_ref[...] = out.astype(o_ref.dtype)


def audio_cumulative_group_norm(x, scale, mask=None, *, eps=1e-3,
                                time_block=1024):
    """x: [B, T, *feature_dims, C]; mask: [B, T, *1, 1] (bool/float) or None."""
    orig_shape = x.shape
    B, T = x.shape[0], x.shape[1]
    C = x.shape[-1]
    F = 1
    for d in x.shape[2:-1]:
        F *= d
    FC = F * C

    # Lane-dense layout: fold all feature dims + channels into the last dim.
    xr = x.reshape(B, T, FC)
    has_mask = mask is not None
    if has_mask:
        m = mask.reshape(B, T, 1).astype(jnp.float32)

    # Per-channel scale tiled across the flattened feature dims -> (1, F*C).
    scale_fc = jnp.tile(scale.astype(jnp.float32).reshape(1, C), (1, F))

    # Pad the flattened feature axis to a multiple of 128 (lane-dense stores)
    # only when the extra HBM traffic is small (<= 12.5%).  Zero-padded lanes
    # are exactly neutral: zero x, zero scale, and fc_true in the statistics.
    FCp = FC
    fc_round = _round_up(FC, 128)
    if fc_round != FC and (fc_round - FC) * 8 <= FC:
        FCp = fc_round
    if FCp != FC:
        xr = jnp.pad(xr, ((0, 0), (0, 0), (0, FCp - FC)))
        scale_fc = jnp.pad(scale_fc, ((0, 0), (0, FCp - FC)))

    cap = _vmem_capacity_bytes()
    budget = cap // 4                 # ~32 MiB on v5e/v6e, ~16 MiB on v7x
    tt = _choose_time_block(T, FCp, jnp.dtype(x.dtype).itemsize,
                            time_block, budget)
    sb = min(_SB, tt)
    nt = pl.cdiv(T, tt)
    needs_tail_mask = (T % tt) != 0   # last tile partially out of bounds

    kernel = functools.partial(
        _cgn_kernel, eps=float(eps), fc_true=float(FC), t_total=T,
        has_mask=has_mask, needs_tail_mask=needs_tail_mask)

    in_specs = [pl.BlockSpec((None, tt, FCp), lambda b, t: (b, t, 0))]
    inputs = [xr]
    if has_mask:
        in_specs.append(pl.BlockSpec((None, tt, 1), lambda b, t: (b, t, 0)))
        inputs.append(m)
    in_specs.append(pl.BlockSpec((1, FCp), lambda b, t: (0, 0)))
    inputs.append(scale_fc)

    out = pl.pallas_call(
        kernel,
        out_shape=jax.ShapeDtypeStruct((B, T, FCp), x.dtype),
        grid_spec=pltpu.PrefetchScalarGridSpec(
            num_scalar_prefetch=0,
            grid=(B, nt),
            in_specs=in_specs,
            out_specs=pl.BlockSpec((None, tt, FCp), lambda b, t: (b, t, 0)),
            scratch_shapes=[
                pltpu.VMEM((sb, sb), jnp.float32),  # triangular prefix matrix
                pltpu.VMEM((1, 1), jnp.float32),    # cumulative sum carry
                pltpu.VMEM((1, 1), jnp.float32),    # cumulative count carry
                pltpu.VMEM((1, 1), jnp.float32),    # cumulative sq-diff carry
            ],
        ),
        compiler_params=pltpu.CompilerParams(
            dimension_semantics=("parallel", "arbitrary"),
            vmem_limit_bytes=int(min(cap // 2, 100 * 1024 * 1024)),
        ),
    )(*inputs)

    if FCp != FC:
        out = out[:, :, :FC]
    return out.reshape(orig_shape)


def _reference(x, scale, mask, eps):
    """Pure-JAX transcription of the PyTorch forward, for verification."""
    x_calc = x.astype(jnp.float32)
    red_axes = tuple(range(2, x.ndim))
    if mask is None:
        mask_calc = jnp.ones_like(x_calc)
    else:
        mask_calc = jnp.broadcast_to(mask.astype(jnp.float32), x_calc.shape)
    sum_t = jnp.sum(x_calc, axis=red_axes, keepdims=True)
    cum_sum = jnp.cumsum(sum_t, axis=1)
    cnt_t = jnp.sum(mask_calc, axis=red_axes, keepdims=True)
    cum_cnt = jnp.cumsum(cnt_t, axis=1)
    safe = jnp.maximum(cum_cnt, 1.0)
    mean = cum_sum / safe
    sq_t = jnp.sum((x_calc - mean) ** 2, axis=red_axes, keepdims=True)
    cum_sq = jnp.cumsum(sq_t, axis=1)
    var = cum_sq / safe
    normed = (x_calc - mean) * lax.rsqrt(var + eps)
    scale_view = scale.astype(jnp.float32).reshape(
        (1,) * (x.ndim - 1) + (scale.shape[0],))
    normed = normed * scale_view
    return (normed * mask_calc).astype(x.dtype)


if __name__ == "__main__":
    # Small shapes consistent with the module: [B, T, *feature_dims, C].
    B, T, F, C = 2, 24, 4, 32          # F*C = 128 (lane-dense, no padding)
    eps = 1e-3

    key = jax.random.PRNGKey(0)
    x = jax.random.normal(key, (B, T, F, C), dtype=jnp.float32)
    scale = jnp.linspace(0.5, 1.5, C, dtype=jnp.float32)

    # Mask: True for valid time steps, shape [B, T, 1, 1].
    lengths = jnp.array([T, 13], dtype=jnp.int32)
    mask = (jnp.arange(T)[None, :] < lengths[:, None]).reshape(B, T, 1, 1)

    ref = _reference(x, scale, mask, eps)

    # Default tiling: a single time tile per batch row.
    out = jax.block_until_ready(
        audio_cumulative_group_norm(x, scale, mask, eps=eps))
    np.testing.assert_allclose(np.asarray(out), np.asarray(ref),
                               rtol=2e-4, atol=2e-4)

    # Small time tiles: exercises the cross-tile f32 carries (3 full tiles).
    out_mt = jax.block_until_ready(
        audio_cumulative_group_norm(x, scale, mask, eps=eps, time_block=8))
    np.testing.assert_allclose(np.asarray(out_mt), np.asarray(ref),
                               rtol=2e-4, atol=2e-4)

    # Ragged T: last time tile is partially out of bounds (no wrapper padding).
    Tr = 20
    x_r, mask_r = x[:, :Tr], mask[:, :Tr]
    ref_r = _reference(x_r, scale, mask_r, eps)
    out_r = jax.block_until_ready(
        audio_cumulative_group_norm(x_r, scale, mask_r, eps=eps, time_block=8))
    np.testing.assert_allclose(np.asarray(out_r), np.asarray(ref_r),
                               rtol=2e-4, atol=2e-4)

    # mask=None fast path: no mask DMA, no final mask multiply.
    out_nm = jax.block_until_ready(
        audio_cumulative_group_norm(x, scale, None, eps=eps, time_block=8))
    ref_nm = _reference(x, scale, None, eps)
    np.testing.assert_allclose(np.asarray(out_nm), np.asarray(ref_nm),
                               rtol=2e-4, atol=2e-4)

    # Lane-padding path: F*C = 120 -> padded to 128 inside the wrapper.
    F2, C2 = 3, 40
    x2 = jax.random.normal(jax.random.PRNGKey(1), (B, T, F2, C2),
                           dtype=jnp.float32)
    scale2 = jnp.linspace(0.8, 1.2, C2, dtype=jnp.float32)
    ref2 = _reference(x2, scale2, mask, eps)
    out2 = jax.block_until_ready(
        audio_cumulative_group_norm(x2, scale2, mask, eps=eps))
    np.testing.assert_allclose(np.asarray(out2), np.asarray(ref2),
                               rtol=2e-4, atol=2e-4)

    print("KERNEL_OK")
</pallas_src>

<mosaic_0001>
module attributes {stable_mosaic.version = 11 : i64} {
  func.func @_cgn_kernel(%arg0: i32, %arg1: i32, %arg2: memref<1x24x128xf32, #tpu.memory_space<vmem>>, %arg3: memref<1x24x1xf32, #tpu.memory_space<vmem>>, %arg4: memref<1x128xf32, #tpu.memory_space<vmem>>, %arg5: memref<1x24x128xf32, #tpu.memory_space<vmem>>, %arg6: memref<24x24xf32, #tpu.memory_space<vmem>>, %arg7: memref<1x1xf32, #tpu.memory_space<vmem>>, %arg8: memref<1x1xf32, #tpu.memory_space<vmem>>, %arg9: memref<1x1xf32, #tpu.memory_space<vmem>>) attributes {dimension_semantics = [#tpu.dimension_semantics<parallel>, #tpu.dimension_semantics<arbitrary>], iteration_bounds = array<i64: 2, 1>, scalar_prefetch = 0 : i64, scratch_operands = 4 : i64, tpu.core_type = #tpu.core_type<tc>, window_params = [{transform_indices = @transform_0, window_bounds = array<i64: 1, 24, 128>}, {transform_indices = @transform_1, window_bounds = array<i64: 1, 24, 1>}, {pipeline_mode = #tpu.pipeline_mode<synchronous>, transform_indices = @transform_2, window_bounds = array<i64: 1, 128>}, {transform_indices = @transform_3, window_bounds = array<i64: 1, 24, 128>}]} {
    %c0_i32 = arith.constant 0 : i32
    %0 = arith.cmpi eq, %arg1, %c0_i32 : i32
    %1 = arith.extui %0 : i1 to i32
    %c0_i32_0 = arith.constant 0 : i32
    %2 = arith.cmpi ne, %1, %c0_i32_0 : i32
    scf.if %2 {
      %63 = tpu.iota {dimensions = array<i32: 0>} : vector<24x24xi32>
      %64 = tpu.iota {dimensions = array<i32: 1>} : vector<24x24xi32>
      %65 = arith.cmpi sle, %64, %63 : vector<24x24xi32>
      %66 = arith.extui %65 : vector<24x24xi1> to vector<24x24xi32>
      %67 = arith.sitofp %66 : vector<24x24xi32> to vector<24x24xf32>
      %c0_35 = arith.constant 0 : index
      %c0_36 = arith.constant 0 : index
      %68 = vector.load %arg6[%c0_35, %c0_36] : memref<24x24xf32, #tpu.memory_space<vmem>>, vector<24x24xf32>
      tpu.vector_store %arg6[%c0_35, %c0_36], %67 {strides = array<i32>} : memref<24x24xf32, #tpu.memory_space<vmem>>, vector<24x24xf32>,
      %cst_37 = arith.constant 0.000000e+00 : f32
      %69 = vector.broadcast %cst_37 : f32 to vector<1x1xf32>
      %c0_38 = arith.constant 0 : index
      %c0_39 = arith.constant 0 : index
      %70 = vector.load %arg7[%c0_38, %c0_39] : memref<1x1xf32, #tpu.memory_space<vmem>>, vector<1x1xf32>
      tpu.vector_store %arg7[%c0_38, %c0_39], %69 {strides = array<i32>} : memref<1x1xf32, #tpu.memory_space<vmem>>, vector<1x1xf32>,
      %cst_40 = arith.constant 0.000000e+00 : f32
      %71 = vector.broadcast %cst_40 : f32 to vector<1x1xf32>
      %c0_41 = arith.constant 0 : index
      %c0_42 = arith.constant 0 : index
      %72 = vector.load %arg8[%c0_41, %c0_42] : memref<1x1xf32, #tpu.memory_space<vmem>>, vector<1x1xf32>
      tpu.vector_store %arg8[%c0_41, %c0_42], %71 {strides = array<i32>} : memref<1x1xf32, #tpu.memory_space<vmem>>, vector<1x1xf32>,
      %cst_43 = arith.constant 0.000000e+00 : f32
      %73 = vector.broadcast %cst_43 : f32 to vector<1x1xf32>
      %c0_44 = arith.constant 0 : index
      %c0_45 = arith.constant 0 : index
      %74 = vector.load %arg9[%c0_44, %c0_45] : memref<1x1xf32, #tpu.memory_space<vmem>>, vector<1x1xf32>
      tpu.vector_store %arg9[%c0_44, %c0_45], %73 {strides = array<i32>} : memref<1x1xf32, #tpu.memory_space<vmem>>, vector<1x1xf32>,
    } else {
    }
    %c0 = arith.constant 0 : index
    %c0_1 = arith.constant 0 : index
    %3 = vector.load %arg6[%c0, %c0_1] : memref<24x24xf32, #tpu.memory_space<vmem>>, vector<24x24xf32>
    %c0_2 = arith.constant 0 : index
    %c0_3 = arith.constant 0 : index
    %c0_4 = arith.constant 0 : index
    %4 = vector.load %arg2[%c0_2, %c0_3, %c0_4] : memref<1x24x128xf32, #tpu.memory_space<vmem>>, vector<1x24x128xf32>
    %5 = vector.shape_cast %4 : vector<1x24x128xf32> to vector<24x128xf32>
    %cst = arith.constant dense<0.000000e+00> : vector<24xf32>
    %6 = vector.multi_reduction <add>, %5, %cst [1] : vector<24x128xf32> to vector<24xf32>
    %7 = vector.shape_cast %6 : vector<24xf32> to vector<24x1xf32>
    %8 = arith.mulf %5, %5 : vector<24x128xf32>
    %cst_5 = arith.constant dense<0.000000e+00> : vector<24xf32>
    %9 = vector.multi_reduction <add>, %8, %cst_5 [1] : vector<24x128xf32> to vector<24xf32>
    %10 = vector.shape_cast %9 : vector<24xf32> to vector<24x1xf32>
    %c0_6 = arith.constant 0 : index
    %c0_7 = arith.constant 0 : index
    %c0_8 = arith.constant 0 : index
    %11 = vector.load %arg3[%c0_6, %c0_7, %c0_8] : memref<1x24x1xf32, #tpu.memory_space<vmem>>, vector<1x24x1xf32>
    %12 = vector.shape_cast %11 : vector<1x24x1xf32> to vector<24x1xf32>
    %cst_9 = arith.constant 1.280000e+02 : f32
    %13 = vector.broadcast %cst_9 : f32 to vector<24x1xf32>
    %14 = arith.mulf %12, %13 : vector<24x1xf32>
    %c0_10 = arith.constant 0 : index
    %c0_11 = arith.constant 0 : index
    %15 = vector.load %arg7[%c0_10, %c0_11] : memref<1x1xf32, #tpu.memory_space<vmem>>, vector<1x1xf32>
    %16 = vector.extract_strided_slice %7 {offsets = [0, 0], sizes = [24, 1], strides = [1, 1]} : vector<24x1xf32> to vector<24x1xf32>
    %cst_12 = arith.constant dense<0.000000e+00> : vector<24x1xf32>
    %17 = tpu.matmul %3, %16, %cst_12 {dimension_numbers = #tpu.dot_dimension_numbers<[1], [0], [0], [1], [0, 0, 1, 1], [], []>} : vector<24x24xf32>, vector<24x1xf32>, vector<24x1xf32> -> vector<24x1xf32>
    %18 = vector.broadcast %15 : vector<1x1xf32> to vector<24x1xf32>
    %19 = arith.addf %17, %18 : vector<24x1xf32>
    %20 = vector.extract_strided_slice %19 {offsets = [23, 0], sizes = [1, 1], strides = [1, 1]} : vector<24x1xf32> to vector<1x1xf32>
    %c0_13 = arith.constant 0 : index
    %c0_14 = arith.constant 0 : index
    %21 = vector.load %arg8[%c0_13, %c0_14] : memref<1x1xf32, #tpu.memory_space<vmem>>, vector<1x1xf32>
    %22 = vector.extract_strided_slice %14 {offsets = [0, 0], sizes = [24, 1], strides = [1, 1]} : vector<24x1xf32> to vector<24x1xf32>
    %cst_15 = arith.constant dense<0.000000e+00> : vector<24x1xf32>
    %23 = tpu.matmul %3, %22, %cst_15 {dimension_numbers = #tpu.dot_dimension_numbers<[1], [0], [0], [1], [0, 0, 1, 1], [], []>} : vector<24x24xf32>, vector<24x1xf32>, vector<24x1xf32> -> vector<24x1xf32>
    %24 = vector.broadcast %21 : vector<1x1xf32> to vector<24x1xf32>
    %25 = arith.addf %23, %24 : vector<24x1xf32>
    %26 = vector.extract_strided_slice %25 {offsets = [23, 0], sizes = [1, 1], strides = [1, 1]} : vector<24x1xf32> to vector<1x1xf32>
    %c0_16 = arith.constant 0 : index
    %c0_17 = arith.constant 0 : index
    %27 = vector.load %arg7[%c0_16, %c0_17] : memref<1x1xf32, #tpu.memory_space<vmem>>, vector<1x1xf32>
    tpu.vector_store %arg7[%c0_16, %c0_17], %20 {strides = array<i32>} : memref<1x1xf32, #tpu.memory_space<vmem>>, vector<1x1xf32>,
    %c0_18 = arith.constant 0 : index
    %c0_19 = arith.constant 0 : index
    %28 = vector.load %arg8[%c0_18, %c0_19] : memref<1x1xf32, #tpu.memory_space<vmem>>, vector<1x1xf32>
    tpu.vector_store %arg8[%c0_18, %c0_19], %26 {strides = array<i32>} : memref<1x1xf32, #tpu.memory_space<vmem>>, vector<1x1xf32>,
    %cst_20 = arith.constant 1.000000e+00 : f32
    %29 = vector.broadcast %cst_20 : f32 to vector<24x1xf32>
    %30 = arith.maximumf %25, %29 : vector<24x1xf32>
    %31 = arith.divf %19, %30 : vector<24x1xf32>
    %cst_21 = arith.constant 2.000000e+00 : f32
    %32 = vector.broadcast %cst_21 : f32 to vector<24x1xf32>
    %33 = arith.mulf %32, %7 : vector<24x1xf32>
    %cst_22 = arith.constant 1.280000e+02 : f32
    %34 = vector.broadcast %cst_22 : f32 to vector<24x1xf32>
    %35 = arith.mulf %34, %31 : vector<24x1xf32>
    %36 = arith.subf %33, %35 : vector<24x1xf32>
    %37 = arith.mulf %31, %36 : vector<24x1xf32>
    %38 = arith.subf %10, %37 : vector<24x1xf32>
    %c0_23 = arith.constant 0 : index
    %c0_24 = arith.constant 0 : index
    %39 = vector.load %arg9[%c0_23, %c0_24] : memref<1x1xf32, #tpu.memory_space<vmem>>, vector<1x1xf32>
    %40 = vector.extract_strided_slice %38 {offsets = [0, 0], sizes = [24, 1], strides = [1, 1]} : vector<24x1xf32> to vector<24x1xf32>
    %cst_25 = arith.constant dense<0.000000e+00> : vector<24x1xf32>
    %41 = tpu.matmul %3, %40, %cst_25 {dimension_numbers = #tpu.dot_dimension_numbers<[1], [0], [0], [1], [0, 0, 1, 1], [], []>} : vector<24x24xf32>, vector<24x1xf32>, vector<24x1xf32> -> vector<24x1xf32>
    %42 = vector.broadcast %39 : vector<1x1xf32> to vector<24x1xf32>
    %43 = arith.addf %41, %42 : vector<24x1xf32>
    %44 = vector.extract_strided_slice %43 {offsets = [23, 0], sizes = [1, 1], strides = [1, 1]} : vector<24x1xf32> to vector<1x1xf32>
    %c0_26 = arith.constant 0 : index
    %c0_27 = arith.constant 0 : index
    %45 = vector.load %arg9[%c0_26, %c0_27] : memref<1x1xf32, #tpu.memory_space<vmem>>, vector<1x1xf32>
    tpu.vector_store %arg9[%c0_26, %c0_27], %44 {strides = array<i32>} : memref<1x1xf32, #tpu.memory_space<vmem>>, vector<1x1xf32>,
    %cst_28 = arith.constant 0.000000e+00 : f32
    %46 = vector.broadcast %cst_28 : f32 to vector<24x1xf32>
    %47 = arith.maximumf %43, %46 : vector<24x1xf32>
    %48 = arith.divf %47, %30 : vector<24x1xf32>
    %cst_29 = arith.constant 1.000000e-03 : f32
    %49 = vector.broadcast %cst_29 : f32 to vector<24x1xf32>
    %50 = arith.addf %48, %49 : vector<24x1xf32>
    %51 = math.rsqrt %50 : vector<24x1xf32>
    %52 = arith.mulf %51, %12 : vector<24x1xf32>
    %53 = vector.broadcast %31 : vector<24x1xf32> to vector<24x128xf32>
    %54 = arith.subf %5, %53 : vector<24x128xf32>
    %55 = vector.broadcast %52 : vector<24x1xf32> to vector<24x128xf32>
    %56 = arith.mulf %54, %55 : vector<24x128xf32>
    %c0_30 = arith.constant 0 : index
    %c0_31 = arith.constant 0 : index
    %57 = vector.load %arg4[%c0_30, %c0_31] : memref<1x128xf32, #tpu.memory_space<vmem>>, vector<1x128xf32>
    %58 = vector.broadcast %57 : vector<1x128xf32> to vector<24x128xf32>
    %59 = arith.mulf %56, %58 : vector<24x128xf32>
    %c0_32 = arith.constant 0 : index
    %c0_33 = arith.constant 0 : index
    %c0_34 = arith.constant 0 : index
    %60 = vector.load %arg5[%c0_32, %c0_33, %c0_34] : memref<1x24x128xf32, #tpu.memory_space<vmem>>, vector<1x24x128xf32>
    %61 = vector.shape_cast %60 : vector<1x24x128xf32> to vector<24x128xf32>
    %62 = vector.shape_cast %59 : vector<24x128xf32> to vector<1x24x128xf32>
    tpu.vector_store %arg5[%c0_32, %c0_33, %c0_34], %62 {strides = array<i32>} : memref<1x24x128xf32, #tpu.memory_space<vmem>>, vector<1x24x128xf32>,
    return
  }
  func.func @transform_0(%arg0: i32, %arg1: i32) -> (i32, i32, i32) {
    %c0_i32 = arith.constant 0 : i32
    %c0_i32_0 = arith.constant 0 : i32
    return %arg0, %arg1, %c0_i32 : i32, i32, i32
  }
  func.func @transform_1(%arg0: i32, %arg1: i32) -> (i32, i32, i32) {
    %c0_i32 = arith.constant 0 : i32
    %c0_i32_0 = arith.constant 0 : i32
    return %arg0, %arg1, %c0_i32 : i32, i32, i32
  }
  func.func @transform_2(%arg0: i32, %arg1: i32) -> (i32, i32) {
    %c0_i32 = arith.constant 0 : i32
    %c0_i32_0 = arith.constant 0 : i32
    %c0_i32_1 = arith.constant 0 : i32
    return %c0_i32, %c0_i32_0 : i32, i32
  }
  func.func @transform_3(%arg0: i32, %arg1: i32) -> (i32, i32, i32) {
    %c0_i32 = arith.constant 0 : i32
    %c0_i32_0 = arith.constant 0 : i32
    return %arg0, %arg1, %c0_i32 : i32, i32, i32
  }
}

</mosaic_0001>

<bundles_post_ra>
// kernel: tpu_custom_call.1
= control target key start
LH: loop header
LB: loop body
LE: loop exit
PB: predicated region body
PF: predicated region fallthrough
CT: control target
= control target key end

     0   :  { %8 = vsyncpa [#allocation7], 0  ;;  %s1282_s0 = inlined_call_operand.vmem [shape: f32[2,24,128], index: 0, kind: input, shape index: {}]   ;;  %s1283_s1 = inlined_call_operand.vmem [shape: f32[2,24,1], index: 1, kind: input, shape index: {}]   ;;  %s1284_s2 = inlined_call_operand.vmem [shape: f32[1,128], index: 2, kind: input, shape index: {}]   ;;  %s1285_s3 = inlined_call_operand.hbm [shape: f32[2,24,128], index: 3, kind: output, shape index: {}]  }
   0x1   :  { %10 = vsyncpa [#allocation7 + $0x1], 0  ;;  %s1053_s12 = smov 0   ;;  %s1055_s13 = smov 0  }
   0x2   :  { %s1057_s14 = smov 0   ;;  %s1059_s15 = smov 0  }
   0x3   :  { %s1061_s16 = smov 0   ;;  %s1063_s17 = smov 0  }
   0x4 LB: > { %s766_s18 = sadd.s32 4294967295, %s1024_s17   ;;  %s767_s19 = sadd.s32 4294967294, %s1024_s17   ;;  %s1024_s17 = sphi %s1063_s17, %s16_s17   ;;  %s1020_s16 = sphi %s1061_s16, %s1292_s16   ;;  %s1016_s15 = sphi %s1059_s15, %s1291_s15   ;;  %s1012_s14 = sphi %s1057_s14, %s1290_s14   ;;  %s1008_s13 = sphi %s1055_s13, %s1289_s13   ;;  %s1004_s12 = sphi %s1053_s12, %s1288_s12  }
   0x5   : > { %s28_s20 = sadd.s32 1, %s1020_s16  ;;  %s114_s21 = sadd.s32 1, %s1012_s14 }
   0x6   : > { %p30_p0 = scmp.ge.s32.totalorder %s28_s20, 2  ;;  %p124_p1 = scmp.ne.s32.totalorder %s1012_s14, %s1008_s13 }
   0x7   : > { %p125_p2 = scmp.eq.s32.totalorder %s766_s18, 1  ;;  %p130_p3 = scmp.ne.s32.totalorder %s1008_s13, %s1004_s12 }
   0x8   : > { %s1294_s20 = smov (%p30_p0, %s28_s20), 0  ;;  %p131_p5 = scmp.eq.s32.totalorder %s767_s19, 1 }
   0x9   : > { %p1093_p4 = por %p125_p2, %p124_p1  ;;  %s109_s23 = ssub.s32 %s1020_s16, %s1294_s20 }
   0xa   : > { %p770_p6 = scmp.ge.s32.totalorder %s1024_s17, 1  ;;  %p112_p7 = scmp.eq.s32.totalorder %s109_s23, 0 }
   0xb   : > { %p1100_p8 = por %p131_p5, %p130_p3  ;;  %p178_p9 = scmp.lt.s32.totalorder %s1024_s17, 3 }
   0xc   : > { %s1106_s25 = scalar_select %p112_p7, %s1012_s14, %s114_s21  }
   0xd   : > { %p179_p10 = pnand %p770_p6, %p178_p9 }
   0xe   : > { %p216_p11 = scmp.lt.s32.totalorder (!%p179_p10), %s1016_s15, 1  ;;  %v240_v3 = vlaneseq (!%p179_p10)  ;;  %v1026_v7 = vmov (!%p179_p10), 0.0   ;;  %vm255_vm1 = vcmask (!%p179_p10), 195584   ;;  %v1027_v9 = vmov (!%p179_p10), 0.0|0.0   ;;  %s212_s7 = sand.u32 (!%p179_p10), 1, %s1008_s13  }
   0xf   : > { %182 = sbr.rel (%p179_p10) target bundleno = 823 (0x337), region = 32  ;;  %855 = vmatprep.subr.bf16.mxu0 (!%p179_p10), %v1027_v9  ;;  %864 = vmatprep.subr.bf16.mxu1 (!%p179_p10), %v1027_v9  ;;  %vm1028_vm3 = vmmov (!%p179_p10), 0   ;;  %vm259_vm5 = vcmask (!%p179_p10), 0   ;;  %v1029_v30 = vmov (!%p179_p10), 0   ;;  %vm474_vm6 = vcmask (!%p179_p10), 7175   ;;  %s1030_s28 = smov (!%p179_p10), [#allocation6]  }
  0x10   : > { %v241_v4 = vshrl.u32 (!%p179_p10), %v240_v3, 7  ;;  %v245_v6 = vand.u32 (!%p179_p10), 127, %v240_v3  ;;  %822 = vmatprep.mubr.msk.f32.mxu1 (!%p179_p10), %vm1028_vm3, %v1026_v7  ;;  %816 = vmatprep.mubr.msk.f32.mxu0 (!%p179_p10), %vm1028_vm3, %v1026_v7  ;;  %260 = vst.msk [vmem:[#allocation3] sm:$0x1] (!%p179_p10), %vm259_vm5, %v1026_v7  ;;  %261 = vst.msk [vmem:[#allocation4] sm:$0x1] (!%p179_p10), %vm259_vm5, %v1026_v7 }
  0x11   : > { %262 = vst.msk [vmem:[#allocation5] sm:$0x1] (!%p179_p10), %vm259_vm5, %v1026_v7  ;;  %932 = vset.pattern.permute.xlu0 (!%p179_p10), %v1029_v30  ;;  %933 = vset.pattern.permute.xlu1 (!%p179_p10), %v1029_v30  ;;  %s868_s8 = smul.u32 (!%p179_p10), 24, %s212_s7  ;;  %s950_s29 = sshll.u32 (!%p179_p10), %s1030_s28, 4  ;;  %s951_s29 = int_to_ptr.vmem [resolvable:$false] %s950_s29 }
  0x12   : > { %v243_v5 = vadd.s32 (!%p179_p10), 16, %v241_v4  ;;  %vm246_vm2 = vcmp.le.s32.totalorder (!%p179_p10), %v245_v6, %v241_v4  ;;  %v242_v11 = vadd.s32 (!%p179_p10), 8, %v241_v4  ;;  %s870_s18 = smul.u32 (!%p179_p10), 384, %s1016_s15 }
  0x13   : > { %v773_v10 = vsel (!%p179_p10), %vm246_vm2, 1.0, %v1026_v7  ;;  %s214_s11 = scalar_lea.vmem (!%p179_p10), [#allocation6], %s868_s8 }
  0x14   : > { %vm248_vm0 = vcmp.le.s32.totalorder (!%p179_p10), %v245_v6, %v243_v5  ;;  %256 = vst.msk [vmem:[#allocation2] sm:$0xff] (!%p179_p10), %vm255_vm1, %v773_v10  ;;  %vm247_vm4 = vcmp.le.s32.totalorder (!%p179_p10), %v245_v6, %v242_v11  ;;  %s669_s19 = sshll.u32 (!%p179_p10), %s214_s11, 4  ;;  %s1229_s19 = int_to_ptr.vmem [resolvable:$true] %s669_s19 }
  0x15   : > { %v775_v8 = vsel (!%p179_p10), %vm248_vm0, 1.0, %v1026_v7  ;;  %v774_v12 = vsel (!%p179_p10), %vm247_vm4, 1.0, %v1026_v7  ;;  %p953_p1 = scmp.lt.s32.totalorder (!%p179_p10), %s1229_s19, %s951_s29 }
  0x16   : > { %s1110_s26 = scalar_select %p216_p11, %s1016_s15, 1  ;;  %258 = vst.msk [vmem:[#allocation2 + $0x10] sm:$0xff] %vm255_vm1, %v775_v8  ;;  %257 = vst.msk [vmem:[#allocation2 + $0x8] sm:$0xff] %vm255_vm1, %v774_v12 }
  0x17   : > { %v776_v31 = vld [vmem:[#allocation3] ss:$0 sm:$0xff]  ;;  %v780_v37 = vld [vmem:[#allocation4] ss:$0 sm:$0xff]  ;;  %s1236_s15 = scalar_lea.sflag [#allocation7], %s212_s7 }
  0x18   : > { %s869_s27 = smul.u32 24, %s1110_s26  ;;  %s1234_s26 = scalar_lea.hbm %s1285_s3, %s870_s18 }
  0x1a   : > { %s223_s30 = scalar_lea.vmem %s1282_s0, %s869_s27  ;;  %s233_s6 = scalar_lea.vmem %s1283_s1, %s869_s27 }
  0x1b   : > { %v1118_v0 = vld [vmem:[%s223_s30] sm:$0xff]  ;;  %v1121_v1 = vld [vmem:[%s223_s30 + $0x10] sm:$0xff]  ;;  %v1123_v2 = vld [vmem:[%s223_s30 + $0x8] sm:$0xff]  ;;  %s946_s27 = scalar_lea.vmem %s1229_s19, 384  ;;  %s952_s30 = scalar_lea.vmem %s951_s29, 768 }
  0x1c   : > { %269 = vadd.xlane.f32.xlu0 %v1118_v0  ;;  %273 = vadd.xlane.f32.xlu1 %v1121_v1  ;;  %v275_v13 = vmul.f32 %v1118_v0, %v1118_v0  ;;  %v276_v14 = vmul.f32 %v1123_v2, %v1123_v2  ;;  %v277_v15 = vmul.f32 %v1121_v1, %v1121_v1  ;;  %v1153_v17 = vld [vmem:[%s233_s6] sm:$0xff]  ;;  %v1155_v18 = vld [vmem:[%s233_s6 + $0x8] sm:$0xff]  ;;  %v1169_v26 = vld [vmem:[%s233_s6 + $0x10] sm:$0xff]  ;;  %p947_p12 = scmp.ne.s32.totalorder %s1229_s19, %s946_s27  ;;  %p954_p2 = scmp.lt.s32.totalorder %s952_s30, %s946_s27 }
  0x1d   : > { %v287_v21 = vmul.f32 128.0, %v1153_v17  ;;  %v288_v22 = vmul.f32 128.0, %v1155_v18  ;;  %v1167_v24 = vld [vmem:[#allocation2 + $0x10] sm:$0xff]  ;;  %v289_v27 = vmul.f32 128.0, %v1169_v26  ;;  %v1178_v28 = vld [vmem:[#allocation2] sm:$0xff]  ;;  %v1185_v29 = vld [vmem:[#allocation2 + $0x8] sm:$0xff] }
  0x1e   : > { %p948_p13 = pnand %p947_p12, %p1093_p4  ;;  %p955_p3 = por %p954_p2, %p953_p1 }
  0x1f   : > { %v859_v25 = vpack.c.bf16 %v288_v22, %v287_v21  ;;  %v784_v21 = vld [vmem:[#allocation5] ss:$0 sm:$0xff] }
  0x20   : > { %271 = vadd.xlane.f32.xlu0 %v1123_v2  ;;  %278 = vadd.xlane.f32.xlu1 %v275_v13  ;;  %p949_p0 = pneg %p948_p13 }
  0x22   : > { %p956_p5 = pnand %p955_p3, %p949_p0 }
  0x24   : > { %280 = vadd.xlane.f32.xlu0 %v276_v14  ;;  %282 = vadd.xlane.f32.xlu1 %v277_v15 }
  0xa9   : > { %v1151_v16 = vpop.xlane.xlu0 %269  ;;  %v1163_v23 = vpop.xlane.xlu1 %273 }
  0xaa   : > { %v486_v56 = vmul.f32 2.0, %v1151_v16 }
  0xad   : > { %v1157_v19 = vpop.xlane.xlu0 %271  ;;  %v279_v6 = vpop.xlane.xlu1 %278 }
  0xae   : > { %v856_v20 = vpack.c.bf16 %v1157_v19, %v1151_v16  ;;  %v487_v61 = vmul.f32 2.0, %v1157_v19 }
  0xb0   : > { %857 = vmatpush3.bf16.msra.mxu0 %v856_v20  ;;  %866 = vmatpush3.bf16.msra.mxu1 %v856_v20 }
  0xb1   : > { %814 = vmatprep.subr.mxu0 %v1026_v7  ;;  %865 = vmatprep.subr.mxu1 %v1026_v7  ;;  %v281_v8 = vpop.xlane.xlu0 %280  ;;  %v283_v20 = vpop.xlane.xlu1 %282 }
  0xb4   : > { %815 = vmatpush3.msra.mxu0 %v1163_v23  ;;  %867 = vmatpush3.msra.mxu1 %v1163_v23 }
  0xb5   : > { %823 = vmatmul.mubr.msk.f32.vlgmr.msra.gmra.mrb[0].mxu1 %vm255_vm1, %v1167_v24  ;;  %858 = vmatprep.subr.bf16.mxu1 %v1027_v9 }
  0xb6   : > { %860 = vmatpush3.bf16.msra.mxu1 %v859_v25  ;;  %831 = vmatprep.mubr.msk.f32.mxu1 %vm1028_vm3, %v1026_v7 }
  0xb7   : > { %829 = vmatprep.subr.mxu1 %v1026_v7  ;;  %817 = vmatmul.mubr.msk.f32.vlgmr.msra.gmra.mrb[0].mxu0 %vm255_vm1, %v1178_v28 }
  0xb8   : > { %819 = vmatprep.mubr.msk.f32.mxu0 %vm1028_vm3, %v1026_v7  ;;  %861 = vmatprep.subr.bf16.mxu0 %v1027_v9  ;;  %v488_v9 = vmul.f32 2.0, %v1163_v23 }
  0xba   : > { %830 = vmatpush3.msra.mxu1 %v289_v27 }
  0xbb   : > { %832 = vmatmul.mubr.msk.f32.vlgmr.msra.gmra.mrb[2].mxu1 %vm255_vm1, %v1178_v28  ;;  %820 = vmatmul.mubr.msk.f32.gmra.mrb[2].mxu0 %vm255_vm1, %v1185_v29 }
  0xbc   : > { %834 = vmatprep.mubr.msk.f32.mxu1 %vm1028_vm3, %v1026_v7  ;;  %846 = vmatprep.mubr.msk.f32.mxu0 %vm1028_vm3, %v1026_v7 }
  0xbf   : > { %835 = vmatmul.mubr.msk.f32.gmra.mrb[4].mxu1 %vm255_vm1, %v1185_v29 }
  0xc0   : > { %837 = vmatprep.mubr.msk.f32.mxu1 %vm1028_vm3, %v1026_v7 }
  0xc3   : > { %838 = vmatmul.mubr.msk.f32.gmra.mrb[6].mxu1 %vm255_vm1, %v1167_v24 }
 0x188   : > { %v383_v32 = vpop.f32.mrb[0].mxu1 }
 0x189   : > { %v384_v33 = vadd.f32 %v776_v31, %v383_v32  ;;  %v824_v34 = vpop.f32.mrb[1].mxu1 }
 0x18a   : > { %v373_v35 = vpop.f32.mrb[0].mxu0 }
 0x18b   : > { %475 = vst.msk [vmem:[#allocation3 - $0x7] sm:$0x80] %vm474_vm6, %v384_v33  ;;  %v818_v36 = vpop.f32.mrb[1].mxu0  ;;  %v374_v52 = vadd.f32 %v776_v31, %v373_v35 }
 0x18e   : > { %v460_v38 = vpop.f32.mrb[2].mxu1  ;;  %v378_v39 = vpop.f32.mrb[2].mxu0 }
 0x18f   : > { %v461_v40 = vadd.f32 %v780_v37, %v460_v38  ;;  %v833_v41 = vpop.f32.mrb[3].mxu1  ;;  %v821_v42 = vpop.f32.mrb[3].mxu0  ;;  %v379_v55 = vadd.f32 %v776_v31, %v378_v39 }
 0x191   : > { %v477_v43 = vmax.f32 %v461_v40, 1.0 }
 0x192   : > { %v465_v44 = vpop.f32.mrb[4].mxu1 }
 0x193   : > { %934 = vrcp.f32 %v477_v43  ;;  %v466_v45 = vadd.f32 %v780_v37, %v465_v44  ;;  %v836_v46 = vpop.f32.mrb[5].mxu1 }
 0x195   : > { %v478_v47 = vmax.f32 %v466_v45, 1.0 }
 0x196   : > { %v470_v48 = vpop.f32.mrb[6].mxu1 }
 0x197   : > { %936 = vrcp.f32 %v478_v47  ;;  %v471_v49 = vadd.f32 %v780_v37, %v470_v48  ;;  %v839_v50 = vpop.f32.mrb[7].mxu1 }
 0x199   : > { %476 = vst.msk [vmem:[#allocation4 - $0x7] sm:$0x80] %vm474_vm6, %v471_v49  ;;  %v479_v51 = vmax.f32 %v471_v49, 1.0 }
 0x19b   : > { %938 = vrcp.f32 %v479_v51 }
 0x19d   : > { %v935_v53 = vpop.eup %934 }
 0x19e   : > { %v481_v54 = vmul.f32 %v935_v53, %v374_v52 }
 0x1a0   : > { %606 = vperm.xlu0 %932, %v481_v54   ;;  %v489_v57 = vmul.f32 128.0, %v481_v54 }
 0x1a1   : > { %v937_v58 = vpop.eup %936 }
 0x1a2   : > { %v483_v59 = vmul.f32 %v937_v58, %v379_v55  ;;  %v492_v60 = vsub.f32 %v486_v56, %v489_v57 }
 0x1a4   : > { %611 = vperm.xlu1 %933, %v483_v59   ;;  %v495_v62 = vmul.f32 %v492_v60, %v481_v54  ;;  %v490_v63 = vmul.f32 128.0, %v483_v59 }
 0x1a5   : > { %v939_v3 = vpop.eup %938 }
 0x1a6   : > { %v485_v4 = vmul.f32 %v939_v3, %v384_v33  ;;  %v493_v5 = vsub.f32 %v487_v61, %v490_v63  ;;  %v498_v12 = vsub.f32 %v279_v6, %v495_v62 }
 0x1a8   : > { %616 = vperm.xlu1 %933, %v485_v4   ;;  %v496_v10 = vmul.f32 %v493_v5, %v483_v59  ;;  %v491_v11 = vmul.f32 128.0, %v485_v4 }
 0x1aa   : > { %v499_v13 = vsub.f32 %v281_v8, %v496_v10  ;;  %v494_v14 = vsub.f32 %v488_v9, %v491_v11 }
 0x1ac   : > { %v862_v15 = vpack.c.bf16 %v499_v13, %v498_v12  ;;  %v497_v16 = vmul.f32 %v494_v14, %v485_v4 }
 0x1ae   : > { %863 = vmatpush3.bf16.msra.mxu0 %v862_v15  ;;  %v500_v19 = vsub.f32 %v283_v20, %v497_v16 }
 0x1af   : > { %844 = vmatprep.subr.mxu0 %v1026_v7 }
 0x1b2   : > { %845 = vmatpush3.msra.mxu0 %v500_v19 }
 0x1b3   : > { %847 = vmatmul.mubr.msk.f32.vlgmr.msra.gmra.mrb[4].mxu0 %vm255_vm1, %v1178_v28 }
 0x1b4   : > { %849 = vmatprep.mubr.msk.f32.mxu0 %vm1028_vm3, %v1026_v7 }
 0x1b7   : > { %850 = vmatmul.mubr.msk.f32.gmra.mrb[6].mxu0 %vm255_vm1, %v1185_v29 }
 0x1b8   : > { %852 = vmatprep.mubr.msk.f32.mxu0 %vm1028_vm3, %v1026_v7 }
 0x1bb   : > { %853 = vmatmul.mubr.msk.f32.gmra.mrb[8].mxu0 %vm255_vm1, %v1167_v24 }
 0x21f   : > { %v607_v47 = vpop.permute.xlu0 %606 }
 0x220   : > { %v619_v49 = vsub.f32 %v1118_v0, %v607_v47 }
 0x223   : > { %v612_v46 = vpop.permute.xlu1 %611 }
 0x227   : > { %v617_v48 = vpop.permute.xlu1 %616 }
 0x228   : > { %v621_v54 = vsub.f32 %v1121_v1, %v617_v48 }
 0x286   : > { %v574_v22 = vpop.f32.mrb[4].mxu0 }
 0x287   : > { %v575_v23 = vadd.f32 %v784_v21, %v574_v22  ;;  %v848_v25 = vpop.f32.mrb[5].mxu0 }
 0x289   : > { %v589_v27 = vmax.f32 %v575_v23, 0.0 }
 0x28a   : > { %v579_v30 = vpop.f32.mrb[6].mxu0 }
 0x28b   : > { %v592_v31 = vmul.f32 %v935_v53, %v589_v27  ;;  %v580_v28 = vadd.f32 %v784_v21, %v579_v30  ;;  %v851_v32 = vpop.f32.mrb[7].mxu0 }
 0x28d   : > { %v595_v33 = vadd.f32 0.001, %v592_v31  ;;  %v590_v34 = vmax.f32 %v580_v28, 0.0 }
 0x28e   : > { %v584_v35 = vpop.f32.mrb[8].mxu0 }
 0x28f   : > { %940 = vrsqrt.f32 %v595_v33  ;;  %v593_v29 = vmul.f32 %v937_v58, %v590_v34  ;;  %v585_v36 = vadd.f32 %v784_v21, %v584_v35  ;;  %v854_v37 = vpop.f32.mrb[9].mxu0 }
 0x291   : > { %v596_v7 = vadd.f32 0.001, %v593_v29  ;;  %588 = vst.msk [vmem:[#allocation5 - $0x7] sm:$0x80] %vm474_vm6, %v585_v36  ;;  %v591_v24 = vmax.f32 %v585_v36, 0.0 }
 0x293   : > { %942 = vrsqrt.f32 %v596_v7  ;;  %v594_v38 = vmul.f32 %v939_v3, %v591_v24 }
 0x295   : > { %v597_v39 = vadd.f32 0.001, %v594_v38 }
 0x297   : > { %944 = vrsqrt.f32 %v597_v39 }
 0x299   : > { %v941_v40 = vpop.eup %940 }
 0x29a   : > { %v601_v41 = vmul.f32 %v941_v40, %v1153_v17  ;;  %v788_v17 = vld [vmem:[%s1284_s2] ss:$0 sm:$0xff] }
 0x29c   : > { %624 = vperm.xlu1 %933, %v601_v41  }
 0x29d   : > { %v943_v42 = vpop.eup %942 }
 0x29e   : > { %v602_v43 = vmul.f32 %v943_v42, %v1155_v18  ;;  %v620_v18 = vsub.f32 %v1123_v2, %v612_v46 }
 0x2a0   : > { %629 = vperm.xlu1 %933, %v602_v43  }
 0x2a1   : > { %v945_v44 = vpop.eup %944 }
 0x2a2   : > { %v603_v45 = vmul.f32 %v945_v44, %v1169_v26 }
 0x2a4   : > { %634 = vperm.xlu1 %933, %v603_v45  }
 0x31b   : > { %v625_v50 = vpop.permute.xlu1 %624 }
 0x31c   : > { %v637_v51 = vmul.f32 %v625_v50, %v619_v49 }
 0x31e   : > { %v647_v52 = vmul.f32 %v788_v17, %v637_v51 }
 0x31f   : > { %v630_v53 = vpop.permute.xlu1 %629 }
 0x320   : > { %650 = vst [vmem:[%s214_s11] sm:$0xff] %v647_v52  ;;  %v638_v26 = vmul.f32 %v630_v53, %v620_v18 }
 0x322   : > { %v648_v55 = vmul.f32 %v788_v17, %v638_v26 }
 0x323   : > { %v635_v0 = vpop.permute.xlu1 %634 }
 0x324   : > { %651 = vst [vmem:[%s214_s11 + $0x8] sm:$0xff] %v648_v55  ;;  %v639_v56 = vmul.f32 %v635_v0, %v621_v54 }
 0x326   : > { %v649_v2 = vmul.f32 %v788_v17, %v639_v56 }
 0x328   : > { %652 = vst [vmem:[%s214_s11 + $0x10] sm:$0xff] %v649_v2 }
 0x329   : > { %959 = shalt.err (!%p956_p5)
}
 0x32a   : > { %s960_s4 = scalar_lea.hbm %s1234_s26, 384  ;;  %s964_s7 = scalar_lea.hbm %s1285_s3, 768 }
 0x32b   : > { %p961_p6 = scmp.ne.s32.totalorder %s1234_s26, %s960_s4  ;;  %p965_p10 = scmp.lt.u32.totalorder %s1234_s26, %s1285_s3 }
 0x32c   : > { %p966_p11 = scmp.lt.u32.totalorder %s964_s7, %s960_s4  ;;  %p968_p13 = scmp.lt.u32.totalorder %s960_s4, %s1234_s26 }
 0x32d   : > { %p962_p7 = pnand %p961_p6, %p1093_p4 }
 0x32e   : > { %p967_p12 = por %p966_p11, %p965_p10 }
 0x32f   : > { %p963_p9 = pneg %p962_p7 }
 0x330   : > { %p969_p0 = por %p968_p13, %p967_p12 }
 0x332   : > { %p970_p1 = pnand %p969_p0, %p963_p9 }
 0x334   : > { %973 = shalt.err (!%p970_p1)
}
 0x335   : > { %s1031_s10 = smov 128   ;;  %s1032_s11 = smov 8  }
 0x336   : > { %871 = dma.vmem_to_hbm [thread:$0]  (%p1093_p4), %s1229_s19, 384, %s1234_s26, %s1236_s15, %s1031_s10, %s1031_s10, %s1032_s11  }
 0x337 PF: > { %p877_p2 = scmp.ge.s32.totalorder %s1024_s17, 2  ;;  %s684_s18 = sand.u32 1, %s1004_s12  }
 0x338   : > { %s685_s21 = scalar_lea.sflag [#allocation7], %s684_s18 }
 0x339   : > { %p874_p3 = pnand %p877_p2, %p1100_p8 }
 0x33b   : > { %999 = dma.done.wait (!%p874_p3), %s685_s21, 384  }
 0x33c   : > { %1001 = vsyncadd (!%p874_p3), %s685_s21, 4294966912  ;;  %s16_s17 = sadd.s32 1, %s1024_s17   ;;  %s1288_s12 = smov %s1008_s13 }
 0x33d   : > { %p13_p5 = scmp.ge.s32.totalorder %s16_s17, 4   ;;  %s1289_s13 = smov %s1012_s14 }
 0x33e   : > { %s1290_s14 = smov %s1106_s25  ;;  %s1291_s15 = smov %s1020_s16 }
 0x33f   : > { %s1292_s16 = smov %s1294_s20  ;;  %15 = sbr.rel (!%p13_p5) target bundleno = 4 (0x4), region = 74 }
 0x346   :  { %690 = vsyncpa [#allocation7], 1 }
 0x347   :  { %692 = vsyncpa [#allocation7 + $0x1], 1 }

</bundles_post_ra>
